<compile_context>
chip_gen: v7x
topology: tpu7x:2x2x1
jax: 0.10.0
libtpu: 0.0.40
codegen_flags: <defaults>
</compile_context>

<pallas_src>
import functools

import jax
import jax.numpy as jnp
from jax.experimental import pallas as pl
from jax.experimental.pallas import tpu as pltpu


def _round_up(x, m):
    return ((x + m - 1) // m) * m


def _vmem_capacity_bytes():
    try:
        return int(pltpu.get_tpu_info().vmem_capacity_bytes)
    except Exception:
        return 64 * 1024 * 1024          # v7x-safe fallback (smallest VMEM generation)


def _choose_batch_tile(B, D, vmem_budget):
    """Largest batch tile keeping double-buffered x + activations inside VMEM."""
    resident_weights = 2 * 2 * (D * 64 + 64 * 32 + 32 * 16) + 8192  # bf16, dbl-buffered
    x_stream = 2 * D * 4                  # double-buffered f32 x tile, per row
    activations = 2 * D + 1800            # bf16 x copy + h1/h2/h3 + output buffers, per row
    avail = max(vmem_budget - resident_weights, 1 << 20)
    tm = avail // (x_stream + activations)
    if B >= 4096:                          # >=4 grid steps so megacore can split the batch
        tm = min(tm, max(1024, -(-B // 4)))
    tm = max(8, min(tm, 16384, _round_up(B, 8)))
    return (tm // 8) * 8


def _mlp_kernel(x_ref, w1_ref, b1_ref, w2_ref, b2_ref, w3_ref, b3_ref,
                w4_ref, b4_ref, out_ref, *, lane_dense):
    """One (TM, D) batch tile through the full MLP + sigmoid."""
    x = x_ref[...].astype(jnp.bfloat16)           # VPU cast, hidden under the x DMA

    h = jnp.dot(x, w1_ref[...], preferred_element_type=jnp.float32) + b1_ref[...]
    h = jnp.maximum(h, 0.0).astype(jnp.bfloat16)

    h = jnp.dot(h, w2_ref[...], preferred_element_type=jnp.float32) + b2_ref[...]
    h = jnp.maximum(h, 0.0).astype(jnp.bfloat16)

    h = jnp.dot(h, w3_ref[...], preferred_element_type=jnp.float32) + b3_ref[...]
    h = jnp.maximum(h, 0.0)                        # (TM, 16) f32

    # Final 16 -> 1 projection: VPU multiply + lane reduce (skips an almost
    # empty N=1 MXU pass).
    col = jnp.sum(h * w4_ref[...], axis=-1, keepdims=True)        # (TM, 1) f32

    if lane_dense:
        # Sublane->lane relayout so bias/exp/reciprocal/store are lane-dense.
        z = col.reshape(1, col.shape[0]) + b4_ref[...]             # (1, TM)
    else:
        z = col + b4_ref[...]                                      # (TM, 1)

    z = jnp.clip(z, -30.0, 30.0)                   # exp never overflows into the approx recip
    sig = pl.reciprocal(1.0 + jnp.exp(-z), approx=True)            # EUP exp + EUP recip

    if lane_dense:
        out_ref[...] = sig.reshape(out_ref.shape).astype(out_ref.dtype)   # (1, 1, TM)
    else:
        out_ref[...] = sig.astype(out_ref.dtype)                          # (TM, 1)


def _build_call(B, D, tm, num_tiles, lane_dense, vmem_limit):
    padded_b = num_tiles * tm

    def resident(shape):
        # Constant block index -> fetched once, stays VMEM-resident across steps.
        return pl.BlockSpec(shape, lambda i: (0,) * len(shape))

    in_specs = [
        pl.BlockSpec((tm, D), lambda i: (i, 0)),   # x: streamed, double-buffered
        resident((D, 64)), resident((1, 64)),
        resident((64, 32)), resident((1, 32)),
        resident((32, 16)), resident((1, 16)),
        resident((1, 16)), resident((1, 1)),
    ]

    if lane_dense:
        out_shape = jax.ShapeDtypeStruct((num_tiles, 1, tm), jnp.float32)
        out_specs = pl.BlockSpec((1, 1, tm), lambda i: (i, 0, 0))
    else:
        out_shape = jax.ShapeDtypeStruct((padded_b, 1), jnp.float32)
        out_specs = pl.BlockSpec((tm, 1), lambda i: (i, 0))

    flops = 2 * padded_b * (D * 64 + 64 * 32 + 32 * 16 + 16)
    bytes_accessed = (B * D * 4 + padded_b * 4
                      + 2 * (D * 64 + 64 * 32 + 32 * 16)
                      + 4 * (64 + 32 + 16 + 16 + 1))

    return pl.pallas_call(
        functools.partial(_mlp_kernel, lane_dense=lane_dense),
        out_shape=out_shape,
        grid=(num_tiles,),
        in_specs=in_specs,
        out_specs=out_specs,
        compiler_params=pltpu.CompilerParams(
            dimension_semantics=("parallel",),     # megacore-shard the batch on v7x
            vmem_limit_bytes=vmem_limit,
        ),
        cost_estimate=pl.CostEstimate(
            flops=flops,
            transcendentals=2 * padded_b,
            bytes_accessed=bytes_accessed,
        ),
    )


_LANE_DENSE_CACHE = {}


def _lane_dense_supported(B, D, tm, num_tiles, vmem_limit, arg_structs):
    """Probe-compile the lane-dense variant once per shape; cache the verdict."""
    key = (B, D, tm, num_tiles)
    if key not in _LANE_DENSE_CACHE:
        try:
            call = _build_call(B, D, tm, num_tiles, True, vmem_limit)
            jax.jit(call).lower(*arg_structs).compile()
            _LANE_DENSE_CACHE[key] = True
        except Exception:
            _LANE_DENSE_CACHE[key] = False
    return _LANE_DENSE_CACHE[key]


def modelo_recomendacao_forward(x, params):
    """x: (B, input_dim) float32. params: w1..w4 with shape (in,out), b1..b4 (1,out)."""
    B, D = x.shape

    vmem_cap = _vmem_capacity_bytes()
    vmem_budget = int(vmem_cap * 0.40)
    vmem_limit = max(32 * 1024 * 1024, min(int(vmem_cap * 0.60), 100 * 1024 * 1024))

    tm = _choose_batch_tile(B, D, vmem_budget)
    num_tiles = -(-B // tm)

    args = (
        x.astype(jnp.float32),                     # streamed as-is: single f32 HBM pass
        params["w1"].astype(jnp.bfloat16), params["b1"].astype(jnp.float32),
        params["w2"].astype(jnp.bfloat16), params["b2"].astype(jnp.float32),
        params["w3"].astype(jnp.bfloat16), params["b3"].astype(jnp.float32),
        params["w4"].astype(jnp.float32).reshape(1, 16),   # lane-broadcast form
        params["b4"].astype(jnp.float32).reshape(1, 1),
    )
    arg_structs = tuple(jax.ShapeDtypeStruct(a.shape, a.dtype) for a in args)

    lane_dense = _lane_dense_supported(B, D, tm, num_tiles, vmem_limit, arg_structs)
    call = _build_call(B, D, tm, num_tiles, lane_dense, vmem_limit)
    out = call(*args)

    if lane_dense:
        return out.reshape(num_tiles * tm, 1)[:B]   # free metadata reshape + tail slice
    return out[:B]


def init_params(key, input_dim):
    """Deterministic synthetic parameters (nn.Linear shapes, pre-transposed)."""
    dims = [(input_dim, 64), (64, 32), (32, 16), (16, 1)]
    keys = jax.random.split(key, 2 * len(dims))
    params = {}
    for i, (din, dout) in enumerate(dims):
        bound = 1.0 / jnp.sqrt(din)   # matches nn.Linear default init range
        params[f"w{i+1}"] = jax.random.uniform(
            keys[2 * i], (din, dout), jnp.float32, -bound, bound)
        params[f"b{i+1}"] = jax.random.uniform(
            keys[2 * i + 1], (1, dout), jnp.float32, -bound, bound)
    return params


if __name__ == "__main__":
    key = jax.random.PRNGKey(0)
    k_x, k_p = jax.random.split(key)

    batch, input_dim = 8, 32
    x = jax.random.normal(k_x, (batch, input_dim), jnp.float32)
    params = init_params(k_p, input_dim)

    out = modelo_recomendacao_forward(x, params)
    out = jax.block_until_ready(out)

    assert out.shape == (batch, 1)
    assert bool(jnp.all((out >= 0.0) & (out <= 1.0)))

    # Pure-JAX f32 reference; kernel uses bf16 matmul inputs + approx recip,
    # so the tolerance is loosened accordingly.
    h = x
    for i in range(1, 4):
        h = jnp.maximum(h @ params[f"w{i}"] + params[f"b{i}"], 0.0)
    ref = jax.nn.sigmoid(h @ params["w4"] + params["b4"])
    assert bool(jnp.allclose(out, ref, atol=2e-2)), float(jnp.max(jnp.abs(out - ref)))

    print("KERNEL_OK")
</pallas_src>

<mosaic_0001>
module attributes {stable_mosaic.version = 11 : i64} {
  func.func @_mlp_kernel(%arg0: i32, %arg1: memref<8x32xf32, #tpu.memory_space<vmem>>, %arg2: memref<32x64xbf16, #tpu.memory_space<vmem>>, %arg3: memref<1x64xf32, #tpu.memory_space<vmem>>, %arg4: memref<64x32xbf16, #tpu.memory_space<vmem>>, %arg5: memref<1x32xf32, #tpu.memory_space<vmem>>, %arg6: memref<32x16xbf16, #tpu.memory_space<vmem>>, %arg7: memref<1x16xf32, #tpu.memory_space<vmem>>, %arg8: memref<1x16xf32, #tpu.memory_space<vmem>>, %arg9: memref<1x1xf32, #tpu.memory_space<vmem>>, %arg10: memref<8x1xf32, #tpu.memory_space<vmem>>) attributes {dimension_semantics = [#tpu.dimension_semantics<parallel>], iteration_bounds = array<i64: 1>, scalar_prefetch = 0 : i64, scratch_operands = 0 : i64, tpu.core_type = #tpu.core_type<tc>, window_params = [{transform_indices = @transform_0, window_bounds = array<i64: 8, 32>}, {pipeline_mode = #tpu.pipeline_mode<synchronous>, transform_indices = @transform_1, window_bounds = array<i64: 32, 64>}, {pipeline_mode = #tpu.pipeline_mode<synchronous>, transform_indices = @transform_2, window_bounds = array<i64: 1, 64>}, {pipeline_mode = #tpu.pipeline_mode<synchronous>, transform_indices = @transform_3, window_bounds = array<i64: 64, 32>}, {pipeline_mode = #tpu.pipeline_mode<synchronous>, transform_indices = @transform_4, window_bounds = array<i64: 1, 32>}, {pipeline_mode = #tpu.pipeline_mode<synchronous>, transform_indices = @transform_5, window_bounds = array<i64: 32, 16>}, {pipeline_mode = #tpu.pipeline_mode<synchronous>, transform_indices = @transform_6, window_bounds = array<i64: 1, 16>}, {pipeline_mode = #tpu.pipeline_mode<synchronous>, transform_indices = @transform_7, window_bounds = array<i64: 1, 16>}, {pipeline_mode = #tpu.pipeline_mode<synchronous>, transform_indices = @transform_8, window_bounds = array<i64: 1, 1>}, {transform_indices = @transform_9, window_bounds = array<i64: 8, 1>}]} {
    %c0 = arith.constant 0 : index
    %c0_0 = arith.constant 0 : index
    %0 = vector.load %arg1[%c0, %c0_0] : memref<8x32xf32, #tpu.memory_space<vmem>>, vector<8x32xf32>
    %1 = arith.truncf %0 : vector<8x32xf32> to vector<8x32xbf16>
    %c0_1 = arith.constant 0 : index
    %c0_2 = arith.constant 0 : index
    %2 = vector.load %arg2[%c0_1, %c0_2] : memref<32x64xbf16, #tpu.memory_space<vmem>>, vector<32x64xbf16>
    %cst = arith.constant dense<0.000000e+00> : vector<8x64xf32>
    %3 = tpu.matmul %1, %2, %cst {dimension_numbers = #tpu.dot_dimension_numbers<[1], [0], [0], [1], [0, 0, 1, 1], [], []>} : vector<8x32xbf16>, vector<32x64xbf16>, vector<8x64xf32> -> vector<8x64xf32>
    %c0_3 = arith.constant 0 : index
    %c0_4 = arith.constant 0 : index
    %4 = vector.load %arg3[%c0_3, %c0_4] : memref<1x64xf32, #tpu.memory_space<vmem>>, vector<1x64xf32>
    %5 = vector.broadcast %4 : vector<1x64xf32> to vector<8x64xf32>
    %6 = arith.addf %3, %5 : vector<8x64xf32>
    %cst_5 = arith.constant 0.000000e+00 : f32
    %7 = vector.broadcast %cst_5 : f32 to vector<8x64xf32>
    %8 = arith.maximumf %6, %7 : vector<8x64xf32>
    %9 = arith.truncf %8 : vector<8x64xf32> to vector<8x64xbf16>
    %c0_6 = arith.constant 0 : index
    %c0_7 = arith.constant 0 : index
    %10 = vector.load %arg4[%c0_6, %c0_7] : memref<64x32xbf16, #tpu.memory_space<vmem>>, vector<64x32xbf16>
    %cst_8 = arith.constant dense<0.000000e+00> : vector<8x32xf32>
    %11 = tpu.matmul %9, %10, %cst_8 {dimension_numbers = #tpu.dot_dimension_numbers<[1], [0], [0], [1], [0, 0, 1, 1], [], []>} : vector<8x64xbf16>, vector<64x32xbf16>, vector<8x32xf32> -> vector<8x32xf32>
    %c0_9 = arith.constant 0 : index
    %c0_10 = arith.constant 0 : index
    %12 = vector.load %arg5[%c0_9, %c0_10] : memref<1x32xf32, #tpu.memory_space<vmem>>, vector<1x32xf32>
    %13 = vector.broadcast %12 : vector<1x32xf32> to vector<8x32xf32>
    %14 = arith.addf %11, %13 : vector<8x32xf32>
    %cst_11 = arith.constant 0.000000e+00 : f32
    %15 = vector.broadcast %cst_11 : f32 to vector<8x32xf32>
    %16 = arith.maximumf %14, %15 : vector<8x32xf32>
    %17 = arith.truncf %16 : vector<8x32xf32> to vector<8x32xbf16>
    %c0_12 = arith.constant 0 : index
    %c0_13 = arith.constant 0 : index
    %18 = vector.load %arg6[%c0_12, %c0_13] : memref<32x16xbf16, #tpu.memory_space<vmem>>, vector<32x16xbf16>
    %cst_14 = arith.constant dense<0.000000e+00> : vector<8x16xf32>
    %19 = tpu.matmul %17, %18, %cst_14 {dimension_numbers = #tpu.dot_dimension_numbers<[1], [0], [0], [1], [0, 0, 1, 1], [], []>} : vector<8x32xbf16>, vector<32x16xbf16>, vector<8x16xf32> -> vector<8x16xf32>
    %c0_15 = arith.constant 0 : index
    %c0_16 = arith.constant 0 : index
    %20 = vector.load %arg7[%c0_15, %c0_16] : memref<1x16xf32, #tpu.memory_space<vmem>>, vector<1x16xf32>
    %21 = vector.broadcast %20 : vector<1x16xf32> to vector<8x16xf32>
    %22 = arith.addf %19, %21 : vector<8x16xf32>
    %cst_17 = arith.constant 0.000000e+00 : f32
    %23 = vector.broadcast %cst_17 : f32 to vector<8x16xf32>
    %24 = arith.maximumf %22, %23 : vector<8x16xf32>
    %c0_18 = arith.constant 0 : index
    %c0_19 = arith.constant 0 : index
    %25 = vector.load %arg8[%c0_18, %c0_19] : memref<1x16xf32, #tpu.memory_space<vmem>>, vector<1x16xf32>
    %26 = vector.broadcast %25 : vector<1x16xf32> to vector<8x16xf32>
    %27 = arith.mulf %24, %26 : vector<8x16xf32>
    %cst_20 = arith.constant dense<0.000000e+00> : vector<8xf32>
    %28 = vector.multi_reduction <add>, %27, %cst_20 [1] : vector<8x16xf32> to vector<8xf32>
    %29 = vector.shape_cast %28 : vector<8xf32> to vector<8x1xf32>
    %c0_21 = arith.constant 0 : index
    %c0_22 = arith.constant 0 : index
    %30 = vector.load %arg9[%c0_21, %c0_22] : memref<1x1xf32, #tpu.memory_space<vmem>>, vector<1x1xf32>
    %31 = vector.broadcast %30 : vector<1x1xf32> to vector<8x1xf32>
    %32 = arith.addf %29, %31 : vector<8x1xf32>
    %cst_23 = arith.constant -3.000000e+01 : f32
    %cst_24 = arith.constant 3.000000e+01 : f32
    %33 = vector.broadcast %cst_23 : f32 to vector<8x1xf32>
    %34 = arith.maximumf %33, %32 : vector<8x1xf32>
    %35 = vector.broadcast %cst_24 : f32 to vector<8x1xf32>
    %36 = arith.minimumf %35, %34 : vector<8x1xf32>
    %cst_25 = arith.constant 0.000000e+00 : f32
    %37 = vector.broadcast %cst_25 : f32 to vector<8x1xf32>
    %38 = arith.subf %37, %36 : vector<8x1xf32>
    %39 = math.exp %38 : vector<8x1xf32>
    %cst_26 = arith.constant 1.000000e+00 : f32
    %40 = vector.broadcast %cst_26 : f32 to vector<8x1xf32>
    %41 = arith.addf %40, %39 : vector<8x1xf32>
    %42 = tpu.reciprocal %41 {approx = true} : vector<8x1xf32> -> vector<8x1xf32>
    %c0_27 = arith.constant 0 : index
    %c0_28 = arith.constant 0 : index
    %43 = vector.load %arg10[%c0_27, %c0_28] : memref<8x1xf32, #tpu.memory_space<vmem>>, vector<8x1xf32>
    tpu.vector_store %arg10[%c0_27, %c0_28], %42 {strides = array<i32>} : memref<8x1xf32, #tpu.memory_space<vmem>>, vector<8x1xf32>,
    return
  }
  func.func @transform_0(%arg0: i32) -> (i32, i32) {
    %c0_i32 = arith.constant 0 : i32
    %c0_i32_0 = arith.constant 0 : i32
    return %arg0, %c0_i32 : i32, i32
  }
  func.func @transform_1(%arg0: i32) -> (i32, i32) {
    %c0_i32 = arith.constant 0 : i32
    %c0_i32_0 = arith.constant 0 : i32
    %c0_i32_1 = arith.constant 0 : i32
    return %c0_i32, %c0_i32_0 : i32, i32
  }
  func.func @transform_2(%arg0: i32) -> (i32, i32) {
    %c0_i32 = arith.constant 0 : i32
    %c0_i32_0 = arith.constant 0 : i32
    %c0_i32_1 = arith.constant 0 : i32
    return %c0_i32, %c0_i32_0 : i32, i32
  }
  func.func @transform_3(%arg0: i32) -> (i32, i32) {
    %c0_i32 = arith.constant 0 : i32
    %c0_i32_0 = arith.constant 0 : i32
    %c0_i32_1 = arith.constant 0 : i32
    return %c0_i32, %c0_i32_0 : i32, i32
  }
  func.func @transform_4(%arg0: i32) -> (i32, i32) {
    %c0_i32 = arith.constant 0 : i32
    %c0_i32_0 = arith.constant 0 : i32
    %c0_i32_1 = arith.constant 0 : i32
    return %c0_i32, %c0_i32_0 : i32, i32
  }
  func.func @transform_5(%arg0: i32) -> (i32, i32) {
    %c0_i32 = arith.constant 0 : i32
    %c0_i32_0 = arith.constant 0 : i32
    %c0_i32_1 = arith.constant 0 : i32
    return %c0_i32, %c0_i32_0 : i32, i32
  }
  func.func @transform_6(%arg0: i32) -> (i32, i32) {
    %c0_i32 = arith.constant 0 : i32
    %c0_i32_0 = arith.constant 0 : i32
    %c0_i32_1 = arith.constant 0 : i32
    return %c0_i32, %c0_i32_0 : i32, i32
  }
  func.func @transform_7(%arg0: i32) -> (i32, i32) {
    %c0_i32 = arith.constant 0 : i32
    %c0_i32_0 = arith.constant 0 : i32
    %c0_i32_1 = arith.constant 0 : i32
    return %c0_i32, %c0_i32_0 : i32, i32
  }
  func.func @transform_8(%arg0: i32) -> (i32, i32) {
    %c0_i32 = arith.constant 0 : i32
    %c0_i32_0 = arith.constant 0 : i32
    %c0_i32_1 = arith.constant 0 : i32
    return %c0_i32, %c0_i32_0 : i32, i32
  }
  func.func @transform_9(%arg0: i32) -> (i32, i32) {
    %c0_i32 = arith.constant 0 : i32
    %c0_i32_0 = arith.constant 0 : i32
    return %arg0, %c0_i32 : i32, i32
  }
}

</mosaic_0001>

<bundles_post_ra>
// kernel: tpu_custom_call.1
= control target key start
LH: loop header
LB: loop body
LE: loop exit
PB: predicated region body
PF: predicated region fallthrough
CT: control target
= control target key end

     0   :  { %v361_v0 = vmov 0.0   ;;  %vm362_vm0 = vmmov 0   ;;  %vm60_vm1 = vcmask 261120   ;;  %vm145_vm2 = vcmask 523264   ;;  %s463_s1 = inlined_call_operand.vmem [shape: bf16[32,64], index: 1, kind: input, shape index: {}]   ;;  %s464_s0 = inlined_call_operand.vmem [shape: f32[8,32], index: 0, kind: input, shape index: {}]   ;;  %s465_s3 = inlined_call_operand.vmem [shape: bf16[64,32], index: 3, kind: input, shape index: {}]   ;;  %s466_s5 = inlined_call_operand.vmem [shape: bf16[32,16], index: 5, kind: input, shape index: {}]   ;;  %s467_s2 = inlined_call_operand.vmem [shape: f32[1,64], index: 2, kind: input, shape index: {}]   ;;  %s468_s4 = inlined_call_operand.vmem [shape: f32[1,32], index: 4, kind: input, shape index: {}]   ;;  %s469_s8 = inlined_call_operand.<no memory space> [shape: f32[1,1], index: 8, kind: input, shape index: {}]   ;;  %s470_s6 = inlined_call_operand.vmem [shape: f32[1,16], index: 6, kind: input, shape index: {}]   ;;  %s471_s7 = inlined_call_operand.vmem [shape: f32[1,16], index: 7, kind: input, shape index: {}]   ;;  %s472_s9 = inlined_call_operand.vmem [shape: f32[8,1], index: 9, kind: output, shape index: {}]  }
   0x1   :  { %319 = vmatprep.subr.bf16.mxu0 %v361_v0  ;;  %v349_v1 = vld [vmem:[%s463_s1] sm:$0xff]   ;;  %323 = vmatprep.mubr.msk.bf16.mxu0 %vm362_vm0, %v361_v0  ;;  %v350_v2 = vld [vmem:[%s463_s1 + $0x8] sm:$0xff]   ;;  %v353_v7 = vld [vmem:[%s465_s3 + $0x10] sm:$0xff]   ;;  %v14_v27 = vstv %s469_s8  ;;  %vm266_vm3 = vcmask 130048   ;;  %vm285_vm4 = vcmask 7168  }
   0x2   :  { %327 = vmatprep.subr.bf16.mxu1 %v361_v0  ;;  %335 = vmatprep.mubr.msk.bf16.mxu1 %vm362_vm0, %v361_v0  ;;  %v35_v3 = vld [vmem:[%s464_s0] sm:$0xff]  ;;  %v352_v5 = vld [vmem:[%s465_s3 + $0x8] sm:$0xff]   ;;  %v354_v8 = vld [vmem:[%s465_s3 + $0x18] sm:$0xff]   ;;  %15 = vst [vmem:[#allocation2] sm:$0x1] %v14_v27 }
   0x3   :  { %320 = vmatpush3.bf16.msra.mxu0 %v349_v1  ;;  %v351_v4 = vld [vmem:[%s465_s3] sm:$0xff]   ;;  %v36_v6 = vpack.c.bf16 %v35_v3, %v35_v3  ;;  %v356_v18 = vld [vmem:[%s466_s5 + $0x8] sm:$0xff]  }
   0x4   :  { %321 = vmatprep.subr.bf16.mxu0 %v361_v0  ;;  %328 = vmatpush3.bf16.msra.mxu1 %v351_v4  ;;  %v355_v9 = vld [vmem:[%s466_s5] sm:$0xff]  }
   0x5   :  { %329 = vmatprep.subr.bf16.mxu1 %v361_v0  ;;  %v291_v10 = vld [vmem:[%s467_s2] ss:$0 sm:$0xff] }
   0x6   :  { %v295_v19 = vld [vmem:[%s468_s4] ss:$0 sm:$0xff] }
   0x7   :  { %322 = vmatpush3.bf16.msra.mxu0 %v350_v2  ;;  %v301_v28 = vld [vmem:[%s470_s6] ss:$0 sm:$0xff] }
   0x8   :  { %339 = vmatprep.subr.bf16.mxu0 %v361_v0  ;;  %330 = vmatpush3.bf16.msra.mxu1 %v352_v5  ;;  %v305_v33 = vld [vmem:[%s471_s7] ss:$0 sm:$0xff] }
   0x9   :  { %331 = vmatprep.subr.bf16.mxu1 %v361_v0  ;;  %v306_v38 = vld [vmem:[#allocation2] ss:$0 sm:$0xff] }
   0xa   :  { %324 = vmatmul.mubr.msk.bf16.vlgmr.msra.gmra.mrb[0].mxu0 %vm60_vm1, %v36_v6 }
   0xb   :  { %343 = vmatprep.mubr.msk.bf16.mxu0 %vm362_vm0, %v361_v0  ;;  %340 = vmatpush3.bf16.msra.mxu0 %v355_v9 }
   0xc   :  { %332 = vmatpush3.bf16.msra.mxu1 %v353_v7  ;;  %341 = vmatprep.subr.bf16.mxu0 %v361_v0 }
   0xd   :  { %333 = vmatprep.subr.bf16.mxu1 %v361_v0 }
   0xf   :  { %342 = vmatpush3.bf16.msra.mxu0 %v356_v18 }
  0x10   :  { %334 = vmatpush3.bf16.msra.mxu1 %v354_v8 }
  0xdd   :  { %v98_v11 = vpop.f32.mrb[0].mxu0 }
  0xde   :  { %v99_v12 = vadd.f32 %v291_v10, %v98_v11  ;;  %v325_v13 = vpop.f32.mrb[1].mxu0 }
  0xdf   :  { %v101_v14 = vpop.f32.mrb[2].mxu0 }
  0xe0   :  { %v104_v15 = vmax.f32 %v99_v12, 0.0  ;;  %v326_v16 = vpop.f32.mrb[3].mxu0 }
  0xe2   :  { %v105_v17 = vpack.c.bf16 %v104_v15, %v104_v15 }
  0xe4   :  { %336 = vmatmul.mubr.msk.bf16.vlgmr.msra.gmra.mrb[0].mxu1 %vm145_vm2, %v105_v17 }
 0x1b7   :  { %v183_v20 = vpop.f32.mrb[0].mxu1 }
 0x1b8   :  { %v184_v21 = vadd.f32 %v295_v19, %v183_v20  ;;  %v337_v22 = vpop.f32.mrb[1].mxu1 }
 0x1b9   :  { %v186_v23 = vpop.f32.mrb[2].mxu1 }
 0x1ba   :  { %v189_v24 = vmax.f32 %v184_v21, 0.0  ;;  %v338_v25 = vpop.f32.mrb[3].mxu1 }
 0x1bc   :  { %v190_v26 = vpack.c.bf16 %v189_v24, %v189_v24 }
 0x1be   :  { %344 = vmatmul.mubr.msk.bf16.vlgmr.msra.gmra.mrb[4].mxu0 %vm60_vm1, %v190_v26 }
 0x291   :  { %v251_v29 = vpop.f32.mrb[4].mxu0 }
 0x292   :  { %v252_v30 = vadd.f32 %v301_v28, %v251_v29  ;;  %v345_v31 = vpop.f32.mrb[5].mxu0 }
 0x293   :  { %v254_v32 = vpop.f32.mrb[6].mxu0 }
 0x294   :  { %v257_v34 = vmax.f32 %v252_v30, 0.0  ;;  %v346_v35 = vpop.f32.mrb[7].mxu0 }
 0x296   :  { %v265_v36 = vmul.f32 %v305_v33, %v257_v34 }
 0x298   :  { %v267_v37 = vsel %vm266_vm3, %v265_v36, 0.0 }
 0x299   :  { %268 = vadd.xlane.f32.xlu0 %v267_v37 }
 0x326   :  { %v269_v39 = vpop.xlane.xlu0 %268 }
 0x327   :  { %v277_v40 = vadd.f32 %v306_v38, %v269_v39 }
 0x329   :  { %v307_v41 = vclamps-f32 %v277_v40, 30.0 }
 0x32b   :  { %v280_v42 = vsub.f32 0.0, %v307_v41 }
 0x32d   :  { %v281_v43 = vmul.f32 1.442695, %v280_v42 }
 0x32f   :  { %357 = vpow2.f32 %v281_v43 }
 0x339   :  { %v358_v44 = vpop.eup %357 }
 0x33a   :  { %v283_v45 = vadd.f32 1.0, %v358_v44 }
 0x33c   :  { %359 = vrcp.f32 %v283_v45 }
 0x346   :  { %v360_v46 = vpop.eup %359 }
 0x347   :  { %286 = vst.msk [vmem:[%s472_s9] sm:$0xff] %vm285_vm4, %v360_v46 }

</bundles_post_ra>
